<compile_context>
chip_gen: v7x
topology: tpu7x:2x2x1
jax: 0.10.0
libtpu: 0.0.40
codegen_flags: <defaults>
</compile_context>

<pallas_src>
import functools

import jax
import jax.numpy as jnp
from jax.experimental import pallas as pl
from jax.experimental.pallas import tpu as pltpu

# Row indices standing in for LabelTensor labels in the label-major layout.
ROW_X1 = 0
ROW_X2 = 1

_LANE = 512              # lane-dense slab width (multiple of 128)
_MAX_TILE_ROWS = 2048    # 2048 x 512 f32 = 4 MiB per output block
_MIN_GRID_STEPS = 4      # >= 2 blocks per TensorCore on v7x (2 TCs/chip)
_SMALL_N = 1 << 15       # below this, a fused XLA elementwise op wins


def _feature_kernel(x_ref, o_ref):
    # x_ref: (2, tile_rows, _LANE)  -- slice 0 = x1, slice 1 = x2 (lane dense)
    # o_ref: (tile_rows, _LANE)
    x1 = x_ref[0]
    x2 = x_ref[1]
    o_ref[...] = (1.0 - x1 * x1) * (1.0 - x2 * x2)


def _round_up(v, m):
    return ((v + m - 1) // m) * m


def _feature_pallas(x_soa):
    """Single-pass Pallas path.  x_soa: [D, N] f32, N % _LANE == 0, N >= 8*_LANE."""
    d, n = x_soa.shape
    rows = n // _LANE
    # Free trailing-dim split: [D, N] -> [D, rows, _LANE] (no data movement).
    x3 = x_soa.reshape(d, rows, _LANE)

    # Tile sizing: aim for >= _MIN_GRID_STEPS grid steps (pipelining + both
    # v7x TensorCores), cap block size at 4 MiB, keep sublane multiple of 8.
    tile_rows = max(8, min(_MAX_TILE_ROWS,
                           _round_up(pl.cdiv(rows, _MIN_GRID_STEPS), 8)))
    grid = (pl.cdiv(rows, tile_rows),)

    out_slab = pl.pallas_call(
        _feature_kernel,
        out_shape=jax.ShapeDtypeStruct((rows, _LANE), x_soa.dtype),
        grid_spec=pltpu.PrefetchScalarGridSpec(
            num_scalar_prefetch=0,
            grid=grid,
            in_specs=[
                # Leading-dim block of 2 covers exactly the x1/x2 rows; 'mu'
                # (and any further labels) are never read.
                pl.BlockSpec((2, tile_rows, _LANE), lambda i: (0, i, 0)),
            ],
            out_specs=pl.BlockSpec((tile_rows, _LANE), lambda i: (i, 0)),
        ),
        compiler_params=pltpu.CompilerParams(
            dimension_semantics=("parallel",),
            vmem_limit_bytes=32 << 20,
        ),
    )(x3)

    # Free trailing-dim merge: [rows, _LANE] -> [N, 1].
    return out_slab.reshape(n, 1)


@functools.partial(jax.jit, static_argnames=("force_pallas",))
def my_feature(x_soa, force_pallas=False):
    """Pallas equivalent of myFeature.forward.

    Args:
      x_soa: float32 array of shape [D, N], label-major (struct-of-arrays):
        row 0 = 'x1', row 1 = 'x2', extra rows (e.g. 'mu') ignored.
      force_pallas: take the Pallas path even below the small-N threshold
        (used for testing); the layout/divisibility requirements still apply.
    Returns:
      float32 array of shape [N, 1] == (1 - x1**2) * (1 - x2**2)  ('k0').
    """
    d, n = x_soa.shape
    assert d >= 2, "need at least the 'x1' and 'x2' rows"

    pallas_ok = (x_soa.dtype == jnp.float32
                 and n % _LANE == 0
                 and n >= 8 * _LANE)
    if (n >= _SMALL_N or force_pallas) and pallas_ok:
        return _feature_pallas(x_soa)

    # Fused XLA fallback: one elementwise HBM pass, optimal for tiny N or
    # awkward shapes/dtypes.
    x1 = x_soa[ROW_X1]
    x2 = x_soa[ROW_X2]
    return ((1.0 - x1 * x1) * (1.0 - x2 * x2)).reshape(n, 1)


if __name__ == "__main__":
    key = jax.random.PRNGKey(0)
    # 16384 collocation points, 3 labeled coordinates ['x1', 'x2', 'mu']
    # (parametric elliptic optimal-control setting), stored label-major so a
    # single pallas_call streams x1/x2 lane-dense with no wrapper copies.
    # rows = 32 -> tile_rows = 8 -> grid = (4,)  (>= 4 steps for v7x).
    N, D = 16384, 3
    x_soa = jax.random.uniform(key, (D, N), dtype=jnp.float32,
                               minval=-1.0, maxval=1.0)

    out = jax.block_until_ready(my_feature(x_soa, force_pallas=True))

    # Pure-JAX reference check of the forward semantics.
    ref = ((1.0 - x_soa[0] ** 2) * (1.0 - x_soa[1] ** 2)).reshape(N, 1)
    assert out.shape == (N, 1)
    assert jnp.allclose(out, ref, atol=1e-6, rtol=1e-6)

    # Small-N fused fallback path matches too.
    n_small = 1000
    out_small = jax.block_until_ready(my_feature(x_soa[:, :n_small]))
    ref_small = ((1.0 - x_soa[0, :n_small] ** 2) *
                 (1.0 - x_soa[1, :n_small] ** 2)).reshape(n_small, 1)
    assert out_small.shape == (n_small, 1)
    assert jnp.allclose(out_small, ref_small, atol=1e-6, rtol=1e-6)

    print("KERNEL_OK")
</pallas_src>

<mosaic_0001>
module attributes {stable_mosaic.version = 11 : i64} {
  func.func @_feature_kernel(%arg0: i32, %arg1: memref<2x8x512xf32, #tpu.memory_space<vmem>>, %arg2: memref<8x512xf32, #tpu.memory_space<vmem>>) attributes {dimension_semantics = [#tpu.dimension_semantics<parallel>], iteration_bounds = array<i64: 4>, scalar_prefetch = 0 : i64, scratch_operands = 0 : i64, tpu.core_type = #tpu.core_type<tc>, window_params = [{transform_indices = @transform_0, window_bounds = array<i64: 2, 8, 512>}, {transform_indices = @transform_1, window_bounds = array<i64: 8, 512>}]} {
    %c0 = arith.constant 0 : index
    %c0_0 = arith.constant 0 : index
    %c0_1 = arith.constant 0 : index
    %0 = vector.load %arg1[%c0, %c0_0, %c0_1] : memref<2x8x512xf32, #tpu.memory_space<vmem>>, vector<1x8x512xf32>
    %1 = vector.shape_cast %0 : vector<1x8x512xf32> to vector<8x512xf32>
    %c1 = arith.constant 1 : index
    %c0_2 = arith.constant 0 : index
    %c0_3 = arith.constant 0 : index
    %2 = vector.load %arg1[%c1, %c0_2, %c0_3] : memref<2x8x512xf32, #tpu.memory_space<vmem>>, vector<1x8x512xf32>
    %3 = vector.shape_cast %2 : vector<1x8x512xf32> to vector<8x512xf32>
    %4 = arith.mulf %1, %1 : vector<8x512xf32>
    %cst = arith.constant 1.000000e+00 : f32
    %5 = vector.broadcast %cst : f32 to vector<8x512xf32>
    %6 = arith.subf %5, %4 : vector<8x512xf32>
    %7 = arith.mulf %3, %3 : vector<8x512xf32>
    %cst_4 = arith.constant 1.000000e+00 : f32
    %8 = vector.broadcast %cst_4 : f32 to vector<8x512xf32>
    %9 = arith.subf %8, %7 : vector<8x512xf32>
    %10 = arith.mulf %6, %9 : vector<8x512xf32>
    %c0_5 = arith.constant 0 : index
    %c0_6 = arith.constant 0 : index
    %11 = vector.load %arg2[%c0_5, %c0_6] : memref<8x512xf32, #tpu.memory_space<vmem>>, vector<8x512xf32>
    tpu.vector_store %arg2[%c0_5, %c0_6], %10 {strides = array<i32>} : memref<8x512xf32, #tpu.memory_space<vmem>>, vector<8x512xf32>,
    return
  }
  func.func @transform_0(%arg0: i32) -> (i32, i32, i32) {
    %c0_i32 = arith.constant 0 : i32
    %c0_i32_0 = arith.constant 0 : i32
    %c0_i32_1 = arith.constant 0 : i32
    return %c0_i32, %arg0, %c0_i32_0 : i32, i32, i32
  }
  func.func @transform_1(%arg0: i32) -> (i32, i32) {
    %c0_i32 = arith.constant 0 : i32
    %c0_i32_0 = arith.constant 0 : i32
    return %arg0, %c0_i32 : i32, i32
  }
}

</mosaic_0001>

<bundles_post_ra>
// kernel: my_feature.1
= control target key start
LH: loop header
LB: loop body
LE: loop exit
PB: predicated region body
PF: predicated region fallthrough
CT: control target
= control target key end

     0   :  { %s322_s6 = smov 0   ;;  %s324_s7 = smov 0   ;;  %s376_s0 = inlined_call_operand.vmem [shape: f32[3,32,512], index: 0, kind: input, shape index: {}]   ;;  %s377_s1 = inlined_call_operand.vmem [shape: f32[32,512], index: 1, kind: output, shape index: {}]  }
   0x1   :  { %s326_s8 = smov 0  }
   0x2 LB: > { %s245_s9 = sadd.s32 4294967295, %s310_s8   ;;  %s339_s10 = sadd.s32 1, %s310_s8   ;;  %s310_s8 = sphi %s326_s8, %s380_s8   ;;  %s306_s7 = sphi %s324_s7, %s379_s7   ;;  %s302_s6 = sphi %s322_s6, %s378_s6  }
   0x3   : > { %s15_s11 = ssub.s32 %s310_s8, %s339_s10  ;;  %s18_s12 = sadd.s32 1, %s306_s7 }
   0x4   : > { %p16_p0 = scmp.eq.s32.totalorder %s15_s11, 0  ;;  %p25_p1 = scmp.ne.s32.totalorder %s306_s7, %s302_s6 }
   0x5   : > { %p26_p2 = scmp.eq.s32.totalorder %s310_s8, 0  ;;  %p248_p4 = scmp.ge.s32.totalorder %s310_s8, 4 }
   0x6   : > { %s348_s13 = scalar_select %p16_p0, %s306_s7, %s18_s12  }
   0x7   : > { %p27_p3 = por %p26_p2, %p25_p1  ;;  %77 = sbr.rel (%p248_p4) target bundleno = 22 (0x16), region = 16 }
   0xe   : > { %80 = sbr.rel (!%p27_p3) target bundleno = 22 (0x16), region = 20  ;;  %s82_s14 = sand.u32 (%p27_p3), 1, %s306_s7  }
   0xf   : > { %s262_s15 = sshll.u32 (%p27_p3), %s310_s8, 5  ;;  %s249_s16 = sshll.u32 (%p27_p3), %s82_s14, 6 }
  0x10   : > { %s87_s19 = scalar_lea.vmem (%p27_p3), %s376_s0, %s262_s15  ;;  %s84_s20 = scalar_lea.vmem (%p27_p3), [#allocation2], %s249_s16 }
  0x11   : > { %v100_v0 = vld [vmem:[%s87_s19] sm:$0xff] (%p27_p3)  ;;  %v102_v1 = vld [vmem:[%s87_s19 + $0x8] sm:$0xff] (%p27_p3)  ;;  %v104_v2 = vld [vmem:[%s87_s19 + $0x10] sm:$0xff] (%p27_p3) }
  0x12   : > { %101 = vst [vmem:[%s84_s20] sm:$0xff] (%p27_p3), %v100_v0  ;;  %103 = vst [vmem:[%s84_s20 + $0x8] sm:$0xff] (%p27_p3), %v102_v1  ;;  %v106_v3 = vld [vmem:[%s87_s19 + $0x18] sm:$0xff] (%p27_p3)  ;;  %v108_v4 = vld [vmem:[%s87_s19 + $0x80] sm:$0xff] (%p27_p3) }
  0x13   : > { %105 = vst [vmem:[%s84_s20 + $0x10] sm:$0xff] (%p27_p3), %v104_v2  ;;  %v110_v5 = vld [vmem:[%s87_s19 + $0x88] sm:$0xff] (%p27_p3)  ;;  %107 = vst [vmem:[%s84_s20 + $0x18] sm:$0xff] (%p27_p3), %v106_v3  ;;  %v112_v6 = vld [vmem:[%s87_s19 + $0x90] sm:$0xff] (%p27_p3) }
  0x14   : > { %109 = vst [vmem:[%s84_s20 + $0x20] sm:$0xff] (%p27_p3), %v108_v4  ;;  %111 = vst [vmem:[%s84_s20 + $0x28] sm:$0xff] (%p27_p3), %v110_v5  ;;  %v114_v7 = vld [vmem:[%s87_s19 + $0x98] sm:$0xff] (%p27_p3) }
  0x15   : > { %113 = vst [vmem:[%s84_s20 + $0x30] sm:$0xff] %v112_v6  ;;  %115 = vst [vmem:[%s84_s20 + $0x38] sm:$0xff] %v114_v7 }
  0x16 PF: > { %p252_p5 = scmp.ge.s32.totalorder %s310_s8, 1  ;;  %p120_p6 = scmp.lt.s32.totalorder %s310_s8, 5 }
  0x18   : > { %p121_p7 = pnand %p252_p5, %p120_p6 }
  0x19   : > { %s127_s21 = sand.u32 (!%p121_p7), 1, %s302_s6   ;;  %p146_p8 = scmp.lt.s32.totalorder (!%p121_p7), %s245_s9, 3 }
  0x1a   : > { %124 = sbr.rel (%p121_p7) target bundleno = 39 (0x27), region = 43  ;;  %s253_s22 = sshll.u32 (!%p121_p7), %s127_s21, 6 }
  0x1b   : > { %s129_s23 = scalar_lea.vmem (!%p121_p7), [#allocation2], %s253_s22 }
  0x1c   : > { %v151_v8 = vld [vmem:[%s129_s23] sm:$0xff] (!%p121_p7)  ;;  %v152_v10 = vld [vmem:[%s129_s23 + $0x8] sm:$0xff] (!%p121_p7)  ;;  %v153_v15 = vld [vmem:[%s129_s23 + $0x10] sm:$0xff] (!%p121_p7) }
  0x1d   : > { %v256_v9 = vld [vmem:[%s129_s23 + $0x20] sm:$0xff] (!%p121_p7)  ;;  %v160_v11 = vmul.f32 (!%p121_p7), %v151_v8, %v151_v8  ;;  %v257_v13 = vld [vmem:[%s129_s23 + $0x28] sm:$0xff] (!%p121_p7)  ;;  %v161_v14 = vmul.f32 (!%p121_p7), %v152_v10, %v152_v10  ;;  %v258_v16 = vld [vmem:[%s129_s23 + $0x30] sm:$0xff] (!%p121_p7)  ;;  %v162_v18 = vmul.f32 (!%p121_p7), %v153_v15, %v153_v15 }
  0x1e   : > { %v168_v12 = vmul.f32 (!%p121_p7), %v256_v9, %v256_v9  ;;  %v169_v17 = vmul.f32 (!%p121_p7), %v257_v13, %v257_v13  ;;  %v170_v19 = vmul.f32 (!%p121_p7), %v258_v16, %v258_v16  ;;  %v154_v20 = vld [vmem:[%s129_s23 + $0x18] sm:$0xff] (!%p121_p7) }
  0x1f   : > { %v259_v21 = vld [vmem:[%s129_s23 + $0x38] sm:$0xff] (!%p121_p7)  ;;  %v164_v22 = vsub.f32 (!%p121_p7), 1.0, %v160_v11  ;;  %v165_v24 = vsub.f32 (!%p121_p7), 1.0, %v161_v14  ;;  %v163_v25 = vmul.f32 (!%p121_p7), %v154_v20, %v154_v20  ;;  %v166_v27 = vsub.f32 (!%p121_p7), 1.0, %v162_v18 }
  0x20   : > { %v172_v23 = vsub.f32 (!%p121_p7), 1.0, %v168_v12  ;;  %v173_v26 = vsub.f32 (!%p121_p7), 1.0, %v169_v17  ;;  %v174_v28 = vsub.f32 (!%p121_p7), 1.0, %v170_v19  ;;  %v171_v29 = vmul.f32 (!%p121_p7), %v259_v21, %v259_v21 }
  0x21   : > { %s382_s9 = smov (!%p146_p8, %s245_s9), 3  ;;  %v167_v31 = vsub.f32 1.0, %v163_v25 }
  0x22   : > { %s263_s24 = sshll.u32 %s382_s9, 5  ;;  %v176_v30 = vmul.f32 %v172_v23, %v164_v22  ;;  %v177_v32 = vmul.f32 %v173_v26, %v165_v24  ;;  %v178_v33 = vmul.f32 %v174_v28, %v166_v27  ;;  %v175_v34 = vsub.f32 1.0, %v171_v29 }
  0x23   : > { %s150_s27 = scalar_lea.vmem %s377_s1, %s263_s24 }
  0x24   : > { %180 = vst [vmem:[%s150_s27] sm:$0xff] %v176_v30  ;;  %181 = vst [vmem:[%s150_s27 + $0x8] sm:$0xff] %v177_v32  ;;  %v179_v35 = vmul.f32 %v175_v34, %v167_v31 }
  0x25   : > { %182 = vst [vmem:[%s150_s27 + $0x10] sm:$0xff] %v178_v33 }
  0x26   : > { %183 = vst [vmem:[%s150_s27 + $0x18] sm:$0xff] %v179_v35 }
  0x27 PF: > { %p8_p9 = scmp.ge.s32.totalorder %s339_s10, 6   ;;  %s378_s6 = smov %s306_s7 }
  0x28   : > { %s379_s7 = smov %s348_s13  ;;  %s380_s8 = smov %s339_s10 }
  0x29   :  { %10 = sbr.rel (!%p8_p9) target bundleno = 2 (0x2), region = 83 }

</bundles_post_ra>
